<compile_context>
chip_gen: v7x
topology: tpu7x:2x2x1
jax: 0.10.0
libtpu: 0.0.40
codegen_flags: <defaults>
</compile_context>

<pallas_src>
import jax
import jax.numpy as jnp
from jax.experimental import pallas as pl
from jax.experimental.pallas import tpu as pltpu

LANE = 128
SUBLANE = 8


def _round_up(x, m):
    return (x + m - 1) // m * m


def _pad2d(a, rows, cols):
    r, c = a.shape
    return jnp.pad(a, ((0, rows - r), (0, cols - c)))


def rbom_forward_kernel(inp_ref, h_ref,
                        w1_ref, b1_ref,
                        wih_ref, whh_ref,
                        brz_ref, bin_ref, bhn_ref,
                        out_ref):
    Hp = h_ref.shape[-1]

    # fc1 + ReLU.  MXU matmul in bf16, accumulate in f32.
    x = jnp.dot(inp_ref[...].astype(jnp.bfloat16), w1_ref[...],
                preferred_element_type=jnp.float32)
    x = jnp.maximum(x + b1_ref[...], 0.0)

    h = h_ref[...]

    # GRU gate pre-activations.  Gate blocks are each Hp (=k*128) wide, so the
    # r/z/n slices below are vreg-tile aligned.
    gx = jnp.dot(x.astype(jnp.bfloat16), wih_ref[...],
                 preferred_element_type=jnp.float32)
    gh = jnp.dot(h.astype(jnp.bfloat16), whh_ref[...],
                 preferred_element_type=jnp.float32)

    # r/z share a single fused (bias_ih + bias_hh) bias.
    rz = jax.nn.sigmoid(gx[:, :2 * Hp] + gh[:, :2 * Hp] + brz_ref[...])
    r = rz[:, :Hp]
    z = rz[:, Hp:]
    # n gate keeps separate biases because bias_hh sits inside r * (.).
    n = jnp.tanh(gx[:, 2 * Hp:] + bin_ref[...] + r * (gh[:, 2 * Hp:] + bhn_ref[...]))

    out_ref[...] = (1.0 - z) * n + z * h


def rbom_forward(inputs, hidden, params):
    """inputs: [B, IN] f32, hidden: [B, H] f32. Returns new hidden [B, H] f32."""
    B, IN = inputs.shape
    H = hidden.shape[-1]

    INp = _round_up(IN, LANE)
    Hp = _round_up(H, LANE)

    # Batch tile: sublane multiple; big tiles for big batches so the MXU M-dim
    # is filled and the grid pipelines; small batches become a single tile.
    tile_b = 256 if B >= 256 else _round_up(B, SUBLANE)
    Bp = _round_up(B, tile_b)
    n_tiles = Bp // tile_b

    f32, bf16 = jnp.float32, jnp.bfloat16

    # --- pad activations to lane-dense layout ---
    inp_p = _pad2d(inputs.astype(f32), Bp, INp)
    h_p = _pad2d(hidden.astype(f32), Bp, Hp)

    # --- pad / repack parameters (weights pre-transposed to [in, out]) ---
    w1 = _pad2d(params["w1"], INp, Hp).astype(bf16)
    b1 = _pad2d(params["b1"], 1, Hp).astype(f32)

    def pad_gates(w):  # [H, 3H] -> gate-aligned [Hp, 3*Hp]
        blocks = [_pad2d(w[:, g * H:(g + 1) * H], Hp, Hp) for g in range(3)]
        return jnp.concatenate(blocks, axis=-1)

    def pad_gate_bias(b):  # [1, 3H] -> [1, 3*Hp]
        blocks = [_pad2d(b[:, g * H:(g + 1) * H], 1, Hp) for g in range(3)]
        return jnp.concatenate(blocks, axis=-1)

    wih = pad_gates(params["wih"]).astype(bf16)
    whh = pad_gates(params["whh"]).astype(bf16)
    bih = pad_gate_bias(params["bih"]).astype(f32)
    bhh = pad_gate_bias(params["bhh"]).astype(f32)

    b_rz = bih[:, :2 * Hp] + bhh[:, :2 * Hp]   # fused r/z bias
    b_in = bih[:, 2 * Hp:]                     # bias_ih, n gate
    b_hn = bhh[:, 2 * Hp:]                     # bias_hh, n gate

    tile = lambda shape: pl.BlockSpec(shape, lambda i: (i, 0))
    resident = lambda shape: pl.BlockSpec(shape, lambda i: (0, 0))

    out_p = pl.pallas_call(
        rbom_forward_kernel,
        out_shape=jax.ShapeDtypeStruct((Bp, Hp), f32),
        grid=(n_tiles,),
        in_specs=[
            tile((tile_b, INp)),       # inputs (tiled over batch)
            tile((tile_b, Hp)),        # hidden (tiled over batch)
            resident((INp, Hp)),       # fc1 weight (resident)
            resident((1, Hp)),         # fc1 bias
            resident((Hp, 3 * Hp)),    # GRU weight_ih (gate-aligned)
            resident((Hp, 3 * Hp)),    # GRU weight_hh (gate-aligned)
            resident((1, 2 * Hp)),     # fused r/z bias
            resident((1, Hp)),         # bias_ih (n gate)
            resident((1, Hp)),         # bias_hh (n gate)
        ],
        out_specs=tile((tile_b, Hp)),
        compiler_params=pltpu.CompilerParams(
            dimension_semantics=("parallel",)),
    )(inp_p, h_p, w1, b1, wih, whh, b_rz, b_in, b_hn)

    return out_p[:B, :H]


def make_params(key, input_shape, hidden_dim):
    """Deterministic synthetic parameters (no checkpoint load). Stored [in, out]."""
    ks = jax.random.split(key, 6)
    scale = 0.1
    return {
        "w1":  scale * jax.random.normal(ks[0], (input_shape, hidden_dim), jnp.float32),
        "b1":  scale * jax.random.normal(ks[1], (1, hidden_dim), jnp.float32),
        "wih": scale * jax.random.normal(ks[2], (hidden_dim, 3 * hidden_dim), jnp.float32),
        "bih": scale * jax.random.normal(ks[3], (1, 3 * hidden_dim), jnp.float32),
        "whh": scale * jax.random.normal(ks[4], (hidden_dim, 3 * hidden_dim), jnp.float32),
        "bhh": scale * jax.random.normal(ks[5], (1, 3 * hidden_dim), jnp.float32),
    }


def rbom_forward_ref(inputs, hidden, p):
    """Pure-JAX f32 reference mirroring torch Linear + GRUCell semantics."""
    x = jnp.maximum(inputs @ p["w1"] + p["b1"], 0.0)
    H = hidden.shape[-1]
    gx = x @ p["wih"] + p["bih"]
    gh = hidden @ p["whh"] + p["bhh"]
    r = jax.nn.sigmoid(gx[:, :H] + gh[:, :H])
    z = jax.nn.sigmoid(gx[:, H:2 * H] + gh[:, H:2 * H])
    n = jnp.tanh(gx[:, 2 * H:] + r * gh[:, 2 * H:])
    return (1.0 - z) * n + z * hidden


# TODO(synk): decision_module (role gather / bmm mixing head) is a separate
# inference-time method, not part of forward(); not implemented here.
# TODO(synk): if this cell is unrolled over a sequence, fuse the time loop
# into one pallas_call (grid=(T,) "arbitrary", h held in a VMEM scratch).

if __name__ == "__main__":
    # shapes implied by the module: bs=2 envs * n_agents=4 -> batch 8
    input_shape, hidden_dim = 16, 32
    batch = 2 * 4

    key = jax.random.PRNGKey(0)
    k_in, k_h, k_p = jax.random.split(key, 3)

    inputs = jax.random.normal(k_in, (batch, input_shape), jnp.float32)
    hidden = jax.random.normal(k_h, (batch, hidden_dim), jnp.float32)
    params = make_params(k_p, input_shape, hidden_dim)

    out = rbom_forward(inputs, hidden, params)
    out = jax.block_until_ready(out)

    ref = rbom_forward_ref(inputs, hidden, params)
    assert out.shape == (batch, hidden_dim)
    max_err = float(jnp.max(jnp.abs(out - ref)))
    # bf16 matmul inputs -> loosened tolerance vs the f32 reference.
    assert max_err < 2e-2, f"mismatch vs reference: max abs err {max_err}"

    print("KERNEL_OK")
</pallas_src>

<mosaic_0001>
module attributes {stable_mosaic.version = 11 : i64} {
  func.func @rbom_forward_kernel(%arg0: i32, %arg1: memref<8x128xf32, #tpu.memory_space<vmem>>, %arg2: memref<8x128xf32, #tpu.memory_space<vmem>>, %arg3: memref<128x128xbf16, #tpu.memory_space<vmem>>, %arg4: memref<1x128xf32, #tpu.memory_space<vmem>>, %arg5: memref<128x384xbf16, #tpu.memory_space<vmem>>, %arg6: memref<128x384xbf16, #tpu.memory_space<vmem>>, %arg7: memref<1x256xf32, #tpu.memory_space<vmem>>, %arg8: memref<1x128xf32, #tpu.memory_space<vmem>>, %arg9: memref<1x128xf32, #tpu.memory_space<vmem>>, %arg10: memref<8x128xf32, #tpu.memory_space<vmem>>) attributes {dimension_semantics = [#tpu.dimension_semantics<parallel>], iteration_bounds = array<i64: 1>, scalar_prefetch = 0 : i64, scratch_operands = 0 : i64, tpu.core_type = #tpu.core_type<tc>, window_params = [{transform_indices = @transform_0, window_bounds = array<i64: 8, 128>}, {transform_indices = @transform_1, window_bounds = array<i64: 8, 128>}, {pipeline_mode = #tpu.pipeline_mode<synchronous>, transform_indices = @transform_2, window_bounds = array<i64: 128, 128>}, {pipeline_mode = #tpu.pipeline_mode<synchronous>, transform_indices = @transform_3, window_bounds = array<i64: 1, 128>}, {pipeline_mode = #tpu.pipeline_mode<synchronous>, transform_indices = @transform_4, window_bounds = array<i64: 128, 384>}, {pipeline_mode = #tpu.pipeline_mode<synchronous>, transform_indices = @transform_5, window_bounds = array<i64: 128, 384>}, {pipeline_mode = #tpu.pipeline_mode<synchronous>, transform_indices = @transform_6, window_bounds = array<i64: 1, 256>}, {pipeline_mode = #tpu.pipeline_mode<synchronous>, transform_indices = @transform_7, window_bounds = array<i64: 1, 128>}, {pipeline_mode = #tpu.pipeline_mode<synchronous>, transform_indices = @transform_8, window_bounds = array<i64: 1, 128>}, {transform_indices = @transform_9, window_bounds = array<i64: 8, 128>}]} {
    %c0 = arith.constant 0 : index
    %c0_0 = arith.constant 0 : index
    %0 = vector.load %arg1[%c0, %c0_0] : memref<8x128xf32, #tpu.memory_space<vmem>>, vector<8x128xf32>
    %1 = arith.truncf %0 : vector<8x128xf32> to vector<8x128xbf16>
    %c0_1 = arith.constant 0 : index
    %c0_2 = arith.constant 0 : index
    %2 = vector.load %arg3[%c0_1, %c0_2] : memref<128x128xbf16, #tpu.memory_space<vmem>>, vector<128x128xbf16>
    %cst = arith.constant dense<0.000000e+00> : vector<8x128xf32>
    %3 = tpu.matmul %1, %2, %cst {dimension_numbers = #tpu.dot_dimension_numbers<[1], [0], [0], [1], [0, 0, 1, 1], [], []>} : vector<8x128xbf16>, vector<128x128xbf16>, vector<8x128xf32> -> vector<8x128xf32>
    %c0_3 = arith.constant 0 : index
    %c0_4 = arith.constant 0 : index
    %4 = vector.load %arg4[%c0_3, %c0_4] : memref<1x128xf32, #tpu.memory_space<vmem>>, vector<1x128xf32>
    %5 = vector.broadcast %4 : vector<1x128xf32> to vector<8x128xf32>
    %6 = arith.addf %3, %5 : vector<8x128xf32>
    %cst_5 = arith.constant 0.000000e+00 : f32
    %7 = vector.broadcast %cst_5 : f32 to vector<8x128xf32>
    %8 = arith.maximumf %6, %7 : vector<8x128xf32>
    %c0_6 = arith.constant 0 : index
    %c0_7 = arith.constant 0 : index
    %9 = vector.load %arg2[%c0_6, %c0_7] : memref<8x128xf32, #tpu.memory_space<vmem>>, vector<8x128xf32>
    %10 = arith.truncf %8 : vector<8x128xf32> to vector<8x128xbf16>
    %c0_8 = arith.constant 0 : index
    %c0_9 = arith.constant 0 : index
    %11 = vector.load %arg5[%c0_8, %c0_9] : memref<128x384xbf16, #tpu.memory_space<vmem>>, vector<128x384xbf16>
    %cst_10 = arith.constant dense<0.000000e+00> : vector<8x384xf32>
    %12 = tpu.matmul %10, %11, %cst_10 {dimension_numbers = #tpu.dot_dimension_numbers<[1], [0], [0], [1], [0, 0, 1, 1], [], []>} : vector<8x128xbf16>, vector<128x384xbf16>, vector<8x384xf32> -> vector<8x384xf32>
    %13 = arith.truncf %9 : vector<8x128xf32> to vector<8x128xbf16>
    %c0_11 = arith.constant 0 : index
    %c0_12 = arith.constant 0 : index
    %14 = vector.load %arg6[%c0_11, %c0_12] : memref<128x384xbf16, #tpu.memory_space<vmem>>, vector<128x384xbf16>
    %cst_13 = arith.constant dense<0.000000e+00> : vector<8x384xf32>
    %15 = tpu.matmul %13, %14, %cst_13 {dimension_numbers = #tpu.dot_dimension_numbers<[1], [0], [0], [1], [0, 0, 1, 1], [], []>} : vector<8x128xbf16>, vector<128x384xbf16>, vector<8x384xf32> -> vector<8x384xf32>
    %16 = vector.extract_strided_slice %12 {offsets = [0, 0], sizes = [8, 256], strides = [1, 1]} : vector<8x384xf32> to vector<8x256xf32>
    %17 = vector.extract_strided_slice %15 {offsets = [0, 0], sizes = [8, 256], strides = [1, 1]} : vector<8x384xf32> to vector<8x256xf32>
    %18 = arith.addf %16, %17 : vector<8x256xf32>
    %c0_14 = arith.constant 0 : index
    %c0_15 = arith.constant 0 : index
    %19 = vector.load %arg7[%c0_14, %c0_15] : memref<1x256xf32, #tpu.memory_space<vmem>>, vector<1x256xf32>
    %20 = vector.broadcast %19 : vector<1x256xf32> to vector<8x256xf32>
    %21 = arith.addf %18, %20 : vector<8x256xf32>
    %22 = arith.negf %21 : vector<8x256xf32>
    %23 = math.exp %22 : vector<8x256xf32>
    %cst_16 = arith.constant 1.000000e+00 : f32
    %24 = vector.broadcast %cst_16 : f32 to vector<8x256xf32>
    %25 = arith.addf %24, %23 : vector<8x256xf32>
    %26 = arith.divf %24, %25 : vector<8x256xf32>
    %27 = vector.extract_strided_slice %26 {offsets = [0, 0], sizes = [8, 128], strides = [1, 1]} : vector<8x256xf32> to vector<8x128xf32>
    %28 = vector.extract_strided_slice %26 {offsets = [0, 128], sizes = [8, 128], strides = [1, 1]} : vector<8x256xf32> to vector<8x128xf32>
    %29 = vector.extract_strided_slice %12 {offsets = [0, 256], sizes = [8, 128], strides = [1, 1]} : vector<8x384xf32> to vector<8x128xf32>
    %c0_17 = arith.constant 0 : index
    %c0_18 = arith.constant 0 : index
    %30 = vector.load %arg8[%c0_17, %c0_18] : memref<1x128xf32, #tpu.memory_space<vmem>>, vector<1x128xf32>
    %31 = vector.broadcast %30 : vector<1x128xf32> to vector<8x128xf32>
    %32 = arith.addf %29, %31 : vector<8x128xf32>
    %33 = vector.extract_strided_slice %15 {offsets = [0, 256], sizes = [8, 128], strides = [1, 1]} : vector<8x384xf32> to vector<8x128xf32>
    %c0_19 = arith.constant 0 : index
    %c0_20 = arith.constant 0 : index
    %34 = vector.load %arg9[%c0_19, %c0_20] : memref<1x128xf32, #tpu.memory_space<vmem>>, vector<1x128xf32>
    %35 = vector.broadcast %34 : vector<1x128xf32> to vector<8x128xf32>
    %36 = arith.addf %33, %35 : vector<8x128xf32>
    %37 = arith.mulf %27, %36 : vector<8x128xf32>
    %38 = arith.addf %32, %37 : vector<8x128xf32>
    %39 = math.tanh %38 : vector<8x128xf32>
    %cst_21 = arith.constant 1.000000e+00 : f32
    %40 = vector.broadcast %cst_21 : f32 to vector<8x128xf32>
    %41 = arith.subf %40, %28 : vector<8x128xf32>
    %42 = arith.mulf %41, %39 : vector<8x128xf32>
    %43 = arith.mulf %28, %9 : vector<8x128xf32>
    %44 = arith.addf %42, %43 : vector<8x128xf32>
    %c0_22 = arith.constant 0 : index
    %c0_23 = arith.constant 0 : index
    %45 = vector.load %arg10[%c0_22, %c0_23] : memref<8x128xf32, #tpu.memory_space<vmem>>, vector<8x128xf32>
    tpu.vector_store %arg10[%c0_22, %c0_23], %44 {strides = array<i32>} : memref<8x128xf32, #tpu.memory_space<vmem>>, vector<8x128xf32>,
    return
  }
  func.func @transform_0(%arg0: i32) -> (i32, i32) {
    %c0_i32 = arith.constant 0 : i32
    %c0_i32_0 = arith.constant 0 : i32
    return %arg0, %c0_i32 : i32, i32
  }
  func.func @transform_1(%arg0: i32) -> (i32, i32) {
    %c0_i32 = arith.constant 0 : i32
    %c0_i32_0 = arith.constant 0 : i32
    return %arg0, %c0_i32 : i32, i32
  }
  func.func @transform_2(%arg0: i32) -> (i32, i32) {
    %c0_i32 = arith.constant 0 : i32
    %c0_i32_0 = arith.constant 0 : i32
    %c0_i32_1 = arith.constant 0 : i32
    return %c0_i32, %c0_i32_0 : i32, i32
  }
  func.func @transform_3(%arg0: i32) -> (i32, i32) {
    %c0_i32 = arith.constant 0 : i32
    %c0_i32_0 = arith.constant 0 : i32
    %c0_i32_1 = arith.constant 0 : i32
    return %c0_i32, %c0_i32_0 : i32, i32
  }
  func.func @transform_4(%arg0: i32) -> (i32, i32) {
    %c0_i32 = arith.constant 0 : i32
    %c0_i32_0 = arith.constant 0 : i32
    %c0_i32_1 = arith.constant 0 : i32
    return %c0_i32, %c0_i32_0 : i32, i32
  }
  func.func @transform_5(%arg0: i32) -> (i32, i32) {
    %c0_i32 = arith.constant 0 : i32
    %c0_i32_0 = arith.constant 0 : i32
    %c0_i32_1 = arith.constant 0 : i32
    return %c0_i32, %c0_i32_0 : i32, i32
  }
  func.func @transform_6(%arg0: i32) -> (i32, i32) {
    %c0_i32 = arith.constant 0 : i32
    %c0_i32_0 = arith.constant 0 : i32
    %c0_i32_1 = arith.constant 0 : i32
    return %c0_i32, %c0_i32_0 : i32, i32
  }
  func.func @transform_7(%arg0: i32) -> (i32, i32) {
    %c0_i32 = arith.constant 0 : i32
    %c0_i32_0 = arith.constant 0 : i32
    %c0_i32_1 = arith.constant 0 : i32
    return %c0_i32, %c0_i32_0 : i32, i32
  }
  func.func @transform_8(%arg0: i32) -> (i32, i32) {
    %c0_i32 = arith.constant 0 : i32
    %c0_i32_0 = arith.constant 0 : i32
    %c0_i32_1 = arith.constant 0 : i32
    return %c0_i32, %c0_i32_0 : i32, i32
  }
  func.func @transform_9(%arg0: i32) -> (i32, i32) {
    %c0_i32 = arith.constant 0 : i32
    %c0_i32_0 = arith.constant 0 : i32
    return %arg0, %c0_i32 : i32, i32
  }
}

</mosaic_0001>

<bundles_post_ra>
// kernel: tpu_custom_call.1
= control target key start
LH: loop header
LB: loop body
LE: loop exit
PB: predicated region body
PF: predicated region fallthrough
CT: control target
= control target key end

     0   :  { %14 = vsyncpa [#allocation3], 0  ;;  %s1346_s0 = inlined_call_operand.hbm [shape: f32[8,128], index: 0, kind: input, shape index: {}]   ;;  %s1347_s1 = inlined_call_operand.hbm [shape: f32[8,128], index: 1, kind: input, shape index: {}]   ;;  %s1348_s2 = inlined_call_operand.hbm [shape: bf16[128,128], index: 2, kind: input, shape index: {}]   ;;  %s1349_s3 = inlined_call_operand.vmem [shape: f32[1,128], index: 3, kind: input, shape index: {}]   ;;  %s1350_s4 = inlined_call_operand.hbm [shape: bf16[128,384], index: 4, kind: input, shape index: {}]   ;;  %s1351_s5 = inlined_call_operand.hbm [shape: bf16[128,384], index: 5, kind: input, shape index: {}]   ;;  %s1352_s6 = inlined_call_operand.vmem [shape: f32[1,256], index: 6, kind: input, shape index: {}]   ;;  %s1353_s7 = inlined_call_operand.vmem [shape: f32[1,128], index: 7, kind: input, shape index: {}]   ;;  %s1354_s8 = inlined_call_operand.vmem [shape: f32[1,128], index: 8, kind: input, shape index: {}]   ;;  %s1355_s9 = inlined_call_operand.hbm [shape: f32[8,128], index: 9, kind: output, shape index: {}]  }
   0x1   :  { %15 = vsyncpa [#allocation6], 0 }
   0x2   :  { %16 = vsyncpa [#allocation9], 0 }
   0x3   :  { %17 = vsyncpa [#allocation4], 0  ;;  %s1149_s30 = smov [#allocation5]   ;;  %s1150_s11 = smov [#allocation8]  }
   0x4   :  { %s34_s10 = sshll.u32 %s1149_s30, 4  ;;  %s57_s12 = sshll.u32 %s1150_s11, 4  ;;  %s35_s10 = int_to_ptr.vmem [resolvable:$true] %s34_s10  ;;  %s1212_s12 = int_to_ptr.vmem [resolvable:$true] %s57_s12 }
   0x5   :  { %s1009_s15 = scalar_lea.hbm %s1347_s1, 128 }
   0x6   :  { %p1010_p0 = scmp.ne.s32.totalorder %s1347_s1, %s1009_s15  ;;  %p1013_p1 = scmp.lt.u32.totalorder %s1009_s15, %s1347_s1 }
   0x8   :  { %p1015_p2 = pnand %p1013_p1, %p1010_p0 }
   0xa   :  { %1018 = shalt.err (!%p1015_p2)
}
   0xb   :  { %s1019_s20 = scalar_lea.vmem %s35_s10, 128  ;;  %p1024_p4 = scmp.lt.s32.totalorder %s35_s10, %s35_s10 }
   0xc   :  { %p1020_p3 = scmp.ne.s32.totalorder %s35_s10, %s1019_s20  ;;  %p1025_p5 = scmp.lt.s32.totalorder %s1019_s20, %s1019_s20 }
   0xe   :  { %p1026_p6 = por %p1025_p5, %p1024_p4 }
  0x10   :  { %p1027_p7 = pnand %p1026_p6, %p1020_p3 }
  0x12   :  { %1030 = shalt.err (!%p1027_p7)
}
  0x13   :  { %37 = dma.hbm_to_vmem [thread:$0]  %s1347_s1, 128, %s35_s10, [#allocation6]  }
  0x14   :  { %s1031_s25 = scalar_lea.hbm %s1350_s4, 3072 }
  0x15   :  { %p1032_p8 = scmp.ne.s32.totalorder %s1350_s4, %s1031_s25  ;;  %p1035_p9 = scmp.lt.u32.totalorder %s1031_s25, %s1350_s4 }
  0x17   :  { %p1037_p10 = pnand %p1035_p9, %p1032_p8 }
  0x19   :  { %1040 = shalt.err (!%p1037_p10)
}
  0x1a   :  { %s1041_s30 = scalar_lea.vmem %s1212_s12, 3072  ;;  %p1046_p12 = scmp.lt.s32.totalorder %s1212_s12, %s1212_s12 }
  0x1b   :  { %p1042_p11 = scmp.ne.s32.totalorder %s1212_s12, %s1041_s30  ;;  %p1047_p13 = scmp.lt.s32.totalorder %s1041_s30, %s1041_s30 }
  0x1d   :  { %p1048_p0 = por %p1047_p13, %p1046_p12 }
  0x1f   :  { %p1049_p1 = pnand %p1048_p0, %p1042_p11 }
  0x21   :  { %1052 = shalt.err (!%p1049_p1)
}
  0x22   :  { %s1151_s1 = smov 192   ;;  %s1152_s10 = smov 12  }
  0x23   :  { %63 = dma.hbm_to_vmem [thread:$0]  %s1350_s4, 3072, %s1212_s12, [#allocation9], %s1151_s1, %s1151_s1, %s1152_s10  }
  0x24   :  { %s1153_s14 = smov [#allocation2]   ;;  %s1154_s16 = smov [#allocation7]  }
  0x25   :  { %s24_s15 = sshll.u32 %s1153_s14, 4  ;;  %s43_s17 = sshll.u32 %s1154_s16, 4  ;;  %s25_s15 = int_to_ptr.vmem [resolvable:$true] %s24_s15  ;;  %s1246_s17 = int_to_ptr.vmem [resolvable:$true] %s43_s17 }
  0x26   :  { %s1053_s20 = scalar_lea.hbm %s1346_s0, 128 }
  0x27   :  { %p1054_p2 = scmp.ne.s32.totalorder %s1346_s0, %s1053_s20  ;;  %p1057_p3 = scmp.lt.u32.totalorder %s1053_s20, %s1346_s0 }
  0x29   :  { %p1059_p4 = pnand %p1057_p3, %p1054_p2 }
  0x2b   :  { %1062 = shalt.err (!%p1059_p4)
}
  0x2c   :  { %s1063_s4 = scalar_lea.vmem %s25_s15, 128  ;;  %p1068_p6 = scmp.lt.s32.totalorder %s25_s15, %s25_s15 }
  0x2d   :  { %p1064_p5 = scmp.ne.s32.totalorder %s25_s15, %s1063_s4  ;;  %p1069_p7 = scmp.lt.s32.totalorder %s1063_s4, %s1063_s4 }
  0x2f   :  { %p1070_p8 = por %p1069_p7, %p1068_p6 }
  0x31   :  { %p1071_p9 = pnand %p1070_p8, %p1064_p5 }
  0x33   :  { %1074 = shalt.err (!%p1071_p9)
}
  0x34   :  { %27 = dma.hbm_to_vmem [thread:$0]  %s1346_s0, 128, %s25_s15, [#allocation3]  }
  0x35   :  { %s1075_s28 = scalar_lea.hbm %s1348_s2, 1024 }
  0x36   :  { %p1076_p10 = scmp.ne.s32.totalorder %s1348_s2, %s1075_s28  ;;  %p1079_p11 = scmp.lt.u32.totalorder %s1075_s28, %s1348_s2 }
  0x38   :  { %p1081_p12 = pnand %p1079_p11, %p1076_p10 }
  0x3a   :  { %1084 = shalt.err (!%p1081_p12)
}
  0x3b   :  { %s1085_s14 = scalar_lea.vmem %s1246_s17, 1024  ;;  %p1090_p0 = scmp.lt.s32.totalorder %s1246_s17, %s1246_s17 }
  0x3c   :  { %p1086_p13 = scmp.ne.s32.totalorder %s1246_s17, %s1085_s14  ;;  %p1091_p1 = scmp.lt.s32.totalorder %s1085_s14, %s1085_s14 }
  0x3e   :  { %p1092_p2 = por %p1091_p1, %p1090_p0 }
  0x40   :  { %p1093_p3 = pnand %p1092_p2, %p1086_p13 }
  0x42   :  { %1096 = shalt.err (!%p1093_p3)
}
  0x43   :  { %s1155_s0 = smov 64   ;;  %s1156_s15 = smov 4  }
  0x44   :  { %49 = dma.hbm_to_vmem [thread:$0]  %s1348_s2, 1024, %s1246_s17, [#allocation6], %s1155_s0, %s1155_s0, %s1156_s15  }
  0x45   :  { %s1157_s19 = smov [#allocation10]   ;;  %s1097_s23 = scalar_lea.hbm %s1351_s5, 3072 }
  0x46   :  { %s69_s20 = sshll.u32 %s1157_s19, 4  ;;  %p1098_p4 = scmp.ne.s32.totalorder %s1351_s5, %s1097_s23  ;;  %s70_s20 = int_to_ptr.vmem [resolvable:$true] %s69_s20 }
  0x47   :  { %p1101_p5 = scmp.lt.u32.totalorder %s1097_s23, %s1351_s5 }
  0x49   :  { %p1103_p6 = pnand %p1101_p5, %p1098_p4 }
  0x4b   :  { %1106 = shalt.err (!%p1103_p6)
}
  0x4c   :  { %s1107_s26 = scalar_lea.vmem %s70_s20, 3072  ;;  %p1112_p8 = scmp.lt.s32.totalorder %s70_s20, %s70_s20 }
  0x4d   :  { %p1108_p7 = scmp.ne.s32.totalorder %s70_s20, %s1107_s26  ;;  %p1113_p9 = scmp.lt.s32.totalorder %s1107_s26, %s1107_s26 }
  0x4f   :  { %p1114_p10 = por %p1113_p9, %p1112_p8 }
  0x51   :  { %p1115_p11 = pnand %p1114_p10, %p1108_p7 }
  0x53   :  { %1118 = shalt.err (!%p1115_p11)
}
  0x54   :  { %75 = dma.hbm_to_vmem [thread:$0]  %s1351_s5, 3072, %s70_s20, [#allocation9], %s1151_s1, %s1151_s1, %s1152_s10  }
  0x55   :  { %1141 = dma.done.wait [#allocation3], 128  }
  0x56   :  { %1142 = vsyncadd [#allocation3], 4294967168 }
  0x57   :  { %1143 = dma.done.wait [#allocation6], 1152  }
  0x58   :  { %1144 = vsyncadd [#allocation6], 4294966144 }
  0x59   :  { %1145 = dma.done.wait [#allocation9], 6144  }
  0x5a   :  { %1146 = vsyncadd [#allocation9], 4294961152  ;;  %v1158_v0 = vmov 0.0   ;;  %vm1159_vm0 = vmmov 0   ;;  %v927_v1 = vld [vmem:[#allocation7] sm:$0xff]   ;;  %v928_v2 = vld [vmem:[#allocation7 + $0x8] sm:$0xff]  }
  0x5b   :  { %854 = vmatprep.subr.bf16.mxu0 %v1158_v0  ;;  %870 = vmatprep.mubr.msk.bf16.mxu0 %vm1159_vm0, %v1158_v0  ;;  %v929_v3 = vld [vmem:[#allocation7 + $0x10] sm:$0xff]   ;;  %v937_v5 = vld [vmem:[#allocation8] ss:$12 sps:$4 sm:$0xff]   ;;  %v930_v6 = vld [vmem:[#allocation7 + $0x18] sm:$0xff]   ;;  %v1160_v36 = vmov 0   ;;  %s1161_s30 = smov [#allocation11]  }
  0x5c   :  { %855 = vmatpush3.bf16.msra.mxu0 %v927_v1  ;;  %v935_v4 = vld [vmem:[#allocation8 + $0x4] ss:$12 sps:$4 sm:$0xff]   ;;  %v939_v7 = vld [vmem:[#allocation8 + $0x1c] ss:$12 sps:$4 sm:$0xff]   ;;  %v943_v9 = vld [vmem:[#allocation8 + $0x34] ss:$12 sps:$4 sm:$0xff]   ;;  %406 = vmatprep.mubr.bf16.mxu1 %v1160_v36 }
  0x5d   :  { %856 = vmatprep.subr.bf16.mxu0 %v1158_v0  ;;  %374 = vmatprep.subr.bf16.mxu1 %v935_v4  ;;  %v941_v8 = vld [vmem:[#allocation8 + $0x18] ss:$12 sps:$4 sm:$0xff]   ;;  %v945_v11 = vld [vmem:[#allocation8 + $0x30] ss:$12 sps:$4 sm:$0xff]   ;;  %v932_v13 = vld [vmem:[#allocation7 + $0x28] sm:$0xff]   ;;  %s755_s11 = sshll.u32 %s1161_s30, 4  ;;  %s756_s11 = int_to_ptr.vmem [resolvable:$true] %s755_s11 }
  0x5e   :  { %375 = vmatpush1.bf16.msra.mxu1 %v937_v5  ;;  %v931_v10 = vld [vmem:[#allocation7 + $0x20] sm:$0xff]   ;;  %v947_v12 = vld [vmem:[#allocation8 + $0x4c] ss:$12 sps:$4 sm:$0xff]   ;;  %v949_v14 = vld [vmem:[#allocation8 + $0x48] ss:$12 sps:$4 sm:$0xff]   ;;  %p1124_p13 = scmp.lt.s32.totalorder %s756_s11, %s756_s11 }
  0x5f   :  { %376 = vmatprep.subr.bf16.mxu1 %v939_v7  ;;  %v951_v15 = vld [vmem:[#allocation8 + $0x64] ss:$12 sps:$4 sm:$0xff]   ;;  %v953_v17 = vld [vmem:[#allocation8 + $0x60] ss:$12 sps:$4 sm:$0xff]   ;;  %v955_v18 = vld [vmem:[#allocation8 + $0x7c] ss:$12 sps:$4 sm:$0xff]  }
  0x60   :  { %857 = vmatpush3.bf16.msra.mxu0 %v928_v2  ;;  %v933_v16 = vld [vmem:[#allocation7 + $0x30] sm:$0xff]   ;;  %v934_v19 = vld [vmem:[#allocation7 + $0x38] sm:$0xff]   ;;  %v942_v26 = vld [vmem:[#allocation8 + $0x20] ss:$12 sps:$4 sm:$0xff]  }
  0x61   :  { %858 = vmatprep.subr.bf16.mxu0 %v1158_v0  ;;  %v98_v20 = vld [vmem:[#allocation2] sm:$0xff]  ;;  %v957_v21 = vld [vmem:[#allocation8 + $0x78] ss:$12 sps:$4 sm:$0xff]   ;;  %v958_v30 = vld [vmem:[#allocation8 + $0x80] ss:$12 sps:$4 sm:$0xff]  }
  0x62   :  { %377 = vmatpush1.bf16.msra.mxu1 %v941_v8  ;;  %v959_v22 = vld [vmem:[#allocation8 + $0x94] ss:$12 sps:$4 sm:$0xff]   ;;  %v99_v24 = vpack.c.bf16 %v98_v20, %v98_v20  ;;  %v961_v25 = vld [vmem:[#allocation8 + $0x90] ss:$12 sps:$4 sm:$0xff]   ;;  %v946_v27 = vld [vmem:[#allocation8 + $0x38] ss:$12 sps:$4 sm:$0xff]  }
  0x63   :  { %378 = vmatprep.subr.bf16.mxu1 %v943_v9  ;;  %v938_v23 = vld [vmem:[#allocation8 + $0x8] ss:$12 sps:$4 sm:$0xff]   ;;  %v950_v28 = vld [vmem:[#allocation8 + $0x50] ss:$12 sps:$4 sm:$0xff]   ;;  %v962_v31 = vld [vmem:[#allocation8 + $0x98] ss:$12 sps:$4 sm:$0xff]  }
  0x64   :  { %859 = vmatpush3.bf16.msra.mxu0 %v929_v3  ;;  %v954_v29 = vld [vmem:[#allocation8 + $0x68] ss:$12 sps:$4 sm:$0xff]   ;;  %v963_v32 = vld [vmem:[#allocation8 + $0xac] ss:$12 sps:$4 sm:$0xff]   ;;  %v966_v34 = vld [vmem:[#allocation8 + $0xb0] ss:$12 sps:$4 sm:$0xff]  }
  0x65   :  { %860 = vmatprep.subr.bf16.mxu0 %v1158_v0  ;;  %v965_v33 = vld [vmem:[#allocation8 + $0xa8] ss:$12 sps:$4 sm:$0xff]   ;;  %v969_v35 = vld [vmem:[#allocation10 + $0x4] ss:$12 sps:$4 sm:$0xff]   ;;  %v967_v44 = vld [vmem:[#allocation10] ss:$12 sps:$4 sm:$0xff]  }
  0x66   :  { %379 = vmatpush1.bf16.msra.mxu1 %v945_v11  ;;  %v766_v37 = vld [vmem:[%s1349_s3] ss:$0 sm:$0xff]  ;;  %v988_v45 = vld [vmem:[#allocation10 + $0x8] ss:$12 sps:$4 sm:$0xff]   ;;  %v970_v48 = vld [vmem:[#allocation10 + $0x18] ss:$12 sps:$4 sm:$0xff]  }
  0x67   :  { %380 = vmatprep.subr.bf16.mxu1 %v947_v12  ;;  %v972_v47 = vld [vmem:[#allocation10 + $0x1c] ss:$12 sps:$4 sm:$0xff]   ;;  %v992_v49 = vld [vmem:[#allocation10 + $0x20] ss:$12 sps:$4 sm:$0xff]   ;;  %v993_v52 = vld [vmem:[#allocation10 + $0x38] ss:$12 sps:$4 sm:$0xff]  }
  0x68   :  { %861 = vmatpush3.bf16.msra.mxu0 %v930_v6  ;;  %v975_v50 = vld [vmem:[#allocation10 + $0x34] ss:$12 sps:$4 sm:$0xff]   ;;  %v973_v51 = vld [vmem:[#allocation10 + $0x30] ss:$12 sps:$4 sm:$0xff]   ;;  %v978_v53 = vld [vmem:[#allocation10 + $0x4c] ss:$12 sps:$4 sm:$0xff]  }
  0x69   :  { %862 = vmatprep.subr.bf16.mxu0 %v1158_v0  ;;  %v976_v54 = vld [vmem:[#allocation10 + $0x48] ss:$12 sps:$4 sm:$0xff]   ;;  %v994_v55 = vld [vmem:[#allocation10 + $0x50] ss:$12 sps:$4 sm:$0xff]   ;;  %v979_v57 = vld [vmem:[#allocation10 + $0x60] ss:$12 sps:$4 sm:$0xff]  }
  0x6a   :  { %381 = vmatpush1.bf16.msra.mxu1 %v949_v14  ;;  %v981_v56 = vld [vmem:[#allocation10 + $0x64] ss:$12 sps:$4 sm:$0xff]   ;;  %v995_v58 = vld [vmem:[#allocation10 + $0x68] ss:$12 sps:$4 sm:$0xff]   ;;  %v996_v61 = vld [vmem:[#allocation10 + $0x80] ss:$12 sps:$4 sm:$0xff]  }
  0x6b   :  { %382 = vmatprep.subr.bf16.mxu1 %v951_v15  ;;  %v984_v59 = vld [vmem:[#allocation10 + $0x7c] ss:$12 sps:$4 sm:$0xff]   ;;  %v982_v60 = vld [vmem:[#allocation10 + $0x78] ss:$12 sps:$4 sm:$0xff]   ;;  %v987_v62 = vld [vmem:[#allocation10 + $0x94] ss:$12 sps:$4 sm:$0xff]   ;;  %v701_v15 = vlaneseq }
  0x6c   :  { %863 = vmatpush3.bf16.msra.mxu0 %v931_v10  ;;  %v985_v63 = vld [vmem:[#allocation10 + $0x90] ss:$12 sps:$4 sm:$0xff]   ;;  %v997_v1 = vld [vmem:[#allocation10 + $0x98] ss:$12 sps:$4 sm:$0xff]   ;;  %v989_v3 = vld [vmem:[#allocation10 + $0xa8] ss:$12 sps:$4 sm:$0xff]  }
  0x6d   :  { %864 = vmatprep.subr.bf16.mxu0 %v1158_v0  ;;  %v991_v2 = vld [vmem:[#allocation10 + $0xac] ss:$12 sps:$4 sm:$0xff]   ;;  %v998_v5 = vld [vmem:[#allocation10 + $0xb0] ss:$12 sps:$4 sm:$0xff]  }
  0x6e   :  { %383 = vmatpush1.bf16.msra.mxu1 %v953_v17  ;;  %v212_v4 = vld [vmem:[#allocation5] sm:$0xff] }
  0x6f   :  { %384 = vmatprep.subr.bf16.mxu1 %v955_v18  ;;  %v455_v6 = vpack.c.bf16 %v212_v4, %v212_v4 }
  0x70   :  { %865 = vmatpush3.bf16.msra.mxu0 %v932_v13 }
  0x71   :  { %866 = vmatprep.subr.bf16.mxu0 %v1158_v0 }
  0x72   :  { %385 = vmatpush1.bf16.msra.mxu1 %v957_v21 }
  0x73   :  { %386 = vmatprep.subr.bf16.mxu1 %v959_v22 }
  0x74   :  { %867 = vmatpush3.bf16.msra.mxu0 %v933_v16  ;;  %v702_v16 = vshrl.u32 %v701_v15, 7 }
  0x75   :  { %868 = vmatprep.subr.bf16.mxu0 %v1158_v0 }
  0x76   :  { %387 = vmatpush1.bf16.msra.mxu1 %v961_v25  ;;  %v703_v17 = vsub.s32 0, %v702_v16  ;;  %v707_v18 = vsub.s32 1, %v702_v16 }
  0x77   :  { %388 = vmatprep.subr.bf16.mxu1 %v963_v32 }
  0x78   :  { %869 = vmatpush3.bf16.msra.mxu0 %v934_v19 }
  0x79   :  { %874 = vmatprep.subr.bf16.mxu0 %v1158_v0 }
  0x7a   :  { %389 = vmatpush1.bf16.msra.mxu1 %v965_v33 }
  0x7b   :  { %871 = vmatmul.mubr.bf16.vlgmr.msra.gmra.mrb[0].mxu0 %v99_v24  ;;  %616 = vmatprep.subr.bf16.mxu1 %v969_v35 }
  0x7c   :  { %875 = vmatpush3.bf16.msra.mxu0 %v938_v23  ;;  %890 = vmatprep.mubr.msk.bf16.mxu0 %vm1159_vm0, %v1158_v0 }
  0x7d   :  { %876 = vmatprep.subr.bf16.mxu0 %v1158_v0 }
  0x80   :  { %877 = vmatpush3.bf16.msra.mxu0 %v942_v26 }
  0x81   :  { %878 = vmatprep.subr.bf16.mxu0 %v1158_v0 }
  0x84   :  { %879 = vmatpush3.bf16.msra.mxu0 %v946_v27 }
  0x85   :  { %880 = vmatprep.subr.bf16.mxu0 %v1158_v0 }
  0x88   :  { %881 = vmatpush3.bf16.msra.mxu0 %v950_v28 }
  0x89   :  { %882 = vmatprep.subr.bf16.mxu0 %v1158_v0 }
  0x8c   :  { %883 = vmatpush3.bf16.msra.mxu0 %v954_v29 }
  0x8d   :  { %884 = vmatprep.subr.bf16.mxu0 %v1158_v0 }
  0x90   :  { %885 = vmatpush3.bf16.msra.mxu0 %v958_v30 }
  0x91   :  { %886 = vmatprep.subr.bf16.mxu0 %v1158_v0 }
  0x94   :  { %887 = vmatpush3.bf16.msra.mxu0 %v962_v31 }
  0x95   :  { %888 = vmatprep.subr.bf16.mxu0 %v1158_v0 }
  0x98   :  { %889 = vmatpush3.bf16.msra.mxu0 %v966_v34 }
  0x99   :  { %894 = vmatprep.subr.bf16.mxu0 %v1158_v0 }
 0x14e   :  { %v205_v38 = vpop.f32.mrb[0].mxu0 }
 0x14f   :  { %v206_v39 = vadd.f32 %v766_v37, %v205_v38  ;;  %v872_v40 = vpop.f32.mrb[1].mxu0  ;;  %v826_v38 = vld [vmem:[%s1354_s8] ss:$0 sm:$0xff]  ;;  %s1119_s8 = scalar_lea.vmem %s756_s11, 128 }
 0x150   :  { %v208_v41 = vpop.f32.mrb[2].mxu0  ;;  %p1120_p12 = scmp.ne.s32.totalorder %s756_s11, %s1119_s8  ;;  %p1125_p0 = scmp.lt.s32.totalorder %s1119_s8, %s1119_s8 }
 0x151   :  { %v211_v42 = vmax.f32 %v206_v39, 0.0  ;;  %v873_v43 = vpop.f32.mrb[3].mxu0  ;;  %v825_v41 = vld [vmem:[%s1353_s7] ss:$0 sm:$0xff] }
 0x152   :  { %p1126_p1 = por %p1125_p0, %p1124_p13 }
 0x153   :  { %v213_v46 = vpack.c.bf16 %v211_v42, %v211_v42 }
 0x154   :  { %p1127_p2 = pnand %p1126_p1, %p1120_p12 }
 0x155   :  { %407 = vmatmul.mubr.bf16.vlgmr.msra.gmra.mrb[0].mxu1 %v213_v46  ;;  %891 = vmatmul.mubr.bf16.vlgmr.msra.gmra.mrb[4].mxu0 %v213_v46 }
 0x156   :  { %617 = vmatpush1.bf16.msra.mxu1 %v967_v44  ;;  %895 = vmatpush3.bf16.msra.mxu0 %v988_v45 }
 0x157   :  { %618 = vmatprep.subr.bf16.mxu1 %v972_v47  ;;  %896 = vmatprep.subr.bf16.mxu0 %v1158_v0 }
 0x158   :  { %648 = vmatprep.mubr.bf16.mxu1 %v1160_v36  ;;  %910 = vmatprep.mubr.msk.bf16.mxu0 %vm1159_vm0, %v1158_v0 }
 0x15a   :  { %619 = vmatpush1.bf16.msra.mxu1 %v970_v48  ;;  %897 = vmatpush3.bf16.msra.mxu0 %v992_v49 }
 0x15b   :  { %620 = vmatprep.subr.bf16.mxu1 %v975_v50  ;;  %898 = vmatprep.subr.bf16.mxu0 %v1158_v0 }
 0x15e   :  { %621 = vmatpush1.bf16.msra.mxu1 %v973_v51  ;;  %899 = vmatpush3.bf16.msra.mxu0 %v993_v52 }
 0x15f   :  { %622 = vmatprep.subr.bf16.mxu1 %v978_v53  ;;  %900 = vmatprep.subr.bf16.mxu0 %v1158_v0 }
 0x162   :  { %623 = vmatpush1.bf16.msra.mxu1 %v976_v54  ;;  %901 = vmatpush3.bf16.msra.mxu0 %v994_v55 }
 0x163   :  { %624 = vmatprep.subr.bf16.mxu1 %v981_v56  ;;  %902 = vmatprep.subr.bf16.mxu0 %v1158_v0 }
 0x166   :  { %625 = vmatpush1.bf16.msra.mxu1 %v979_v57  ;;  %903 = vmatpush3.bf16.msra.mxu0 %v995_v58 }
 0x167   :  { %626 = vmatprep.subr.bf16.mxu1 %v984_v59  ;;  %904 = vmatprep.subr.bf16.mxu0 %v1158_v0 }
 0x16a   :  { %627 = vmatpush1.bf16.msra.mxu1 %v982_v60  ;;  %905 = vmatpush3.bf16.msra.mxu0 %v996_v61 }
 0x16b   :  { %628 = vmatprep.subr.bf16.mxu1 %v987_v62  ;;  %906 = vmatprep.subr.bf16.mxu0 %v1158_v0 }
 0x16e   :  { %629 = vmatpush1.bf16.msra.mxu1 %v985_v63  ;;  %907 = vmatpush3.bf16.msra.mxu0 %v997_v1 }
 0x16f   :  { %630 = vmatprep.subr.bf16.mxu1 %v991_v2  ;;  %908 = vmatprep.subr.bf16.mxu0 %v1158_v0  ;;  %v699_v0 = vld [vmem:[%s1352_s6] sm:$0x3] }
 0x170   :  { %v704_v19 = vrot.slane %v699_v0, %v703_v17  ;;  %v708_v26 = vrot.slane %v699_v0, %v707_v18 }
 0x172   :  { %631 = vmatpush1.bf16.msra.mxu1 %v989_v3  ;;  %909 = vmatpush3.bf16.msra.mxu0 %v998_v5 }
 0x175   :  { %649 = vmatmul.mubr.bf16.vlgmr.msra.gmra.mrb[4].mxu1 %v455_v6  ;;  %911 = vmatmul.mubr.bf16.vlgmr.msra.gmra.mrb[8].mxu0 %v455_v6 }
 0x228   :  { %v408_v7 = vpop.f32.mrb[0].mxu1  ;;  %v449_v8 = vpop.f32.mrb[4].mxu0 }
 0x229   :  { %v410_v9 = vpop.f32.mrb[1].mxu1  ;;  %v892_v10 = vpop.f32.mrb[5].mxu0  ;;  %v732_v43 = vadd.f32 %v825_v41, %v449_v8 }
 0x22a   :  { %v412_v11 = vpop.f32.mrb[2].mxu1  ;;  %v452_v12 = vpop.f32.mrb[6].mxu0 }
 0x22b   :  { %v413_v13 = vpop.f32.mrb[3].mxu1  ;;  %v893_v14 = vpop.f32.mrb[7].mxu0 }
 0x248   :  { %v650_v20 = vpop.f32.mrb[4].mxu1  ;;  %v691_v21 = vpop.f32.mrb[8].mxu0 }
 0x249   :  { %v697_v22 = vadd.f32 %v650_v20, %v408_v7  ;;  %v652_v23 = vpop.f32.mrb[5].mxu1  ;;  %v912_v24 = vpop.f32.mrb[9].mxu0  ;;  %v740_v40 = vadd.f32 %v826_v38, %v691_v21 }
 0x24a   :  { %v698_v25 = vadd.f32 %v652_v23, %v410_v9  ;;  %v654_v27 = vpop.f32.mrb[6].mxu1  ;;  %v694_v28 = vpop.f32.mrb[10].mxu0 }
 0x24b   :  { %v711_v29 = vadd.f32 %v704_v19, %v697_v22  ;;  %v655_v30 = vpop.f32.mrb[7].mxu1  ;;  %v913_v31 = vpop.f32.mrb[11].mxu0 }
 0x24c   :  { %v712_v33 = vadd.f32 %v708_v26, %v698_v25 }
 0x24d   :  { %v823_v32 = vmul.f32 -1.442695, %v711_v29 }
 0x24e   :  { %v824_v34 = vmul.f32 -1.442695, %v712_v33 }
 0x24f   :  { %999 = vpow2.f32 %v823_v32 }
 0x250   :  { %1001 = vpow2.f32 %v824_v34 }
 0x259   :  { %v1000_v35 = vpop.eup %999 }
 0x25a   :  { %v719_v36 = vadd.f32 1.0, %v1000_v35  ;;  %v1002_v37 = vpop.eup %1001 }
 0x25b   :  { %v720_v39 = vadd.f32 1.0, %v1002_v37 }
 0x25c   :  { %1003 = vrcp.f32 %v719_v36 }
 0x25d   :  { %1005 = vrcp.f32 %v720_v39 }
 0x266   :  { %v1004_v42 = vpop.eup %1003 }
 0x267   :  { %v741_v44 = vmul.f32 %v1004_v42, %v740_v40  ;;  %v1006_v46 = vpop.eup %1005 }
 0x268   :  { %v744_v47 = vsub.f32 1.0, %v1006_v46  ;;  %v746_v50 = vmul.f32 %v1006_v46, %v212_v4 }
 0x269   :  { %v742_v45 = vadd.f32 %v741_v44, %v732_v43 }
 0x26b   :  { %1007 = vtanh.f32 %v742_v45 }
 0x275   :  { %v1008_v48 = vpop.eup %1007 }
 0x276   :  { %v745_v49 = vmul.f32 %v1008_v48, %v744_v47 }
 0x278   :  { %v747_v51 = vadd.f32 %v746_v50, %v745_v49 }
 0x27a   :  { %748 = vst [vmem:[#allocation11] sm:$0xff] %v747_v51 }
 0x27b   :  { %1130 = shalt.err (!%p1127_p2)
}
 0x27c   :  { %s1131_s14 = scalar_lea.hbm %s1355_s9, 128 }
 0x27d   :  { %p1132_p3 = scmp.ne.s32.totalorder %s1355_s9, %s1131_s14  ;;  %p1135_p4 = scmp.lt.u32.totalorder %s1131_s14, %s1355_s9 }
 0x27f   :  { %p1137_p5 = pnand %p1135_p4, %p1132_p3 }
 0x281   :  { %1140 = shalt.err (!%p1137_p5)
}
 0x282   :  { %758 = dma.vmem_to_hbm [thread:$0]  %s756_s11, 128, %s1355_s9, [#allocation4]  }
 0x283   :  { %1147 = dma.done.wait [#allocation4], 128  }
 0x284   :  { %1148 = vsyncadd [#allocation4], 4294967168 }
 0x285   :  { %762 = vsyncpa [#allocation3], 1 }
 0x286   :  { %763 = vsyncpa [#allocation6], 1 }
 0x287   :  { %764 = vsyncpa [#allocation9], 1 }
 0x288   :  { %765 = vsyncpa [#allocation4], 1 }

</bundles_post_ra>
